<compile_context>
chip_gen: v5e
topology: v5e:2x2
jax: 0.10.0
libtpu: 0.0.40
codegen_flags: <defaults>
</compile_context>

<pallas_src>
import math

import jax
import jax.numpy as jnp
import numpy as np
from jax import lax
from jax.experimental import pallas as pl
from jax.experimental.pallas import tpu as pltpu


def _make_token_embed_kernel(l_tile):
    """Kernel closed over the static tile length."""

    def kernel(x_ref, h_ref, w_ref, b_ref, o_ref):
        # x_ref: (1, TL, C)   activation tile, native dtype
        # h_ref: (1, 1, 2, C) circular halo rows: [x[(start-1) % L], x[(start+TL) % L]]
        # w_ref: (3*C, D)     packed weights (f32, or bf16 for bf16 activations)
        # b_ref: (1, D)       bias, f32
        # o_ref: (1, TL, D)   output tile
        x32 = x_ref[0].astype(jnp.float32)          # (TL, C)
        h32 = h_ref[0, 0].astype(jnp.float32)       # (2, C)

        # Within-tile shift on the XLU, then patch the two wrap rows with halos.
        x_prev = pltpu.roll(x32, 1, axis=0)                 # row t -> x[t-1]
        x_next = pltpu.roll(x32, l_tile - 1, axis=0)        # row t -> x[t+1]
        rows = lax.broadcasted_iota(jnp.int32, x32.shape, 0)
        x_prev = jnp.where(rows == 0, h32[0:1, :], x_prev)
        x_next = jnp.where(rows == l_tile - 1, h32[1:2, :], x_next)

        # One fused MXU matmul: (TL, 3C) @ (3C, D), f32 accumulation.
        x3 = jnp.concatenate([x_prev, x32, x_next], axis=1)
        acc = jnp.dot(x3.astype(w_ref.dtype), w_ref[...],
                      preferred_element_type=jnp.float32)
        acc = acc + b_ref[...]                      # (1, D) broadcast, f32
        o_ref[0] = acc.astype(o_ref.dtype)

    return kernel


def _tpu_vmem_capacity_bytes():
    try:
        return int(pltpu.get_tpu_info().vmem_capacity_bytes)
    except Exception:
        return 64 << 20  # conservative fallback (v7x per-core VMEM)


def _pick_l_tile(seq_len, batch, d_model, x_itemsize, out_itemsize, vmem_cap):
    """Largest multiple-of-8 divisor of L under a generation-aware VMEM budget."""
    d_lanes = -(-d_model // 128) * 128
    # Per-row VMEM bytes: double-buffered out tile + lane-padded x tile + f32 temps.
    per_row = d_lanes * (2 * out_itemsize + 4) + 128 * (2 * x_itemsize + 12)
    if vmem_cap >= (96 << 20):          # 128-MiB parts (v5e / v6e): go big
        budget, max_rows = 24 << 20, 2048
    else:                               # 64-MiB parts (v7x): stay conservative
        budget, max_rows = 8 << 20, 1024
    target = min(max_rows, max(8, budget // per_row))
    target -= target % 8
    target = max(8, target)

    if seq_len % 8 != 0:
        return seq_len                  # single full-extent tile is the only legal split

    tl = seq_len
    cand = min(target, seq_len)
    cand -= cand % 8
    while cand >= 8:
        if seq_len % cand == 0:
            tl = cand
            break
        cand -= 8

    # A (1, 1) grid idles one of v7x's two TensorCores — force >= 2 grid steps.
    if batch == 1 and tl == seq_len and seq_len >= 16 and (seq_len // 2) % 8 == 0:
        tl = seq_len // 2
    return tl


def prepare_token_embedding_params(weight, bias, compute_dtype=jnp.float32):
    """Pack Conv1d params once (hoisted out of the per-forward path).

    weight: (D, C_in, 3), bias: (D,) -> w_packed (3*C_in, D), b_packed (1, D) f32.
    Row order of w_packed is k-major, c-minor: row k*C + c == W[:, c, k], matching
    the in-kernel [x_prev | x | x_next] concatenation.
    """
    d_model, c_in, k = weight.shape
    assert k == 3, "TokenEmbedding uses kernel_size=3"
    w = jnp.transpose(weight, (2, 1, 0)).reshape(k * c_in, d_model).astype(compute_dtype)
    b = bias.reshape(1, d_model).astype(jnp.float32)
    return w, b


def token_embedding_apply(x, w_packed, b_packed, *, out_dtype=None, l_tile=None):
    """x: (B, L, C_in); returns (B, L, d_model). out_dtype defaults to x.dtype."""
    B, L, C = x.shape
    kc, D = w_packed.shape
    assert kc == 3 * C, "packed weight does not match input channels"

    out_dtype = x.dtype if out_dtype is None else np.dtype(out_dtype)
    x_it = x.dtype.itemsize
    out_it = np.dtype(out_dtype).itemsize
    w_it = w_packed.dtype.itemsize

    vmem_cap = _tpu_vmem_capacity_bytes()
    tl = l_tile if l_tile is not None else _pick_l_tile(L, B, D, x_it, out_it, vmem_cap)
    assert L % tl == 0 and (tl == L or tl % 8 == 0), "l_tile must divide L (multiple of 8)"
    n_t = L // tl

    # Circular halo rows per tile: [x[(start-1) % L], x[(start+tl) % L]] — tiny gather.
    starts = jnp.arange(n_t, dtype=jnp.int32) * tl
    prev_idx = (starts - 1) % L
    next_idx = (starts + tl) % L
    halos = jnp.stack((x[:, prev_idx, :], x[:, next_idx, :]), axis=2)  # (B, n_t, 2, C)

    # VMEM footprint with lane padding (C / small dims pad to 128 lanes, 8 sublanes).
    d_lanes = -(-D // 128) * 128
    kc_pad = -(-kc // 8) * 8
    est = (2 * tl * 128 * x_it              # x tile, double-buffered, lane-padded
           + 2 * 8 * 128 * x_it             # halo tile, double-buffered
           + 2 * tl * d_lanes * out_it      # output tile, double-buffered
           + 2 * kc_pad * d_lanes * w_it    # resident packed weight
           + 2 * 8 * d_lanes * 4            # resident bias
           + tl * d_lanes * 4               # f32 accumulator temp
           + 3 * tl * 128 * 4               # x_prev / x_next / x3 f32 temps
           + (2 << 20))                     # headroom
    vmem_limit = int(min(int(0.75 * vmem_cap), max(32 << 20, 2 * est)))

    kernel = _make_token_embed_kernel(tl)
    out = pl.pallas_call(
        kernel,
        out_shape=jax.ShapeDtypeStruct((B, L, D), out_dtype),
        grid_spec=pltpu.PrefetchScalarGridSpec(
            num_scalar_prefetch=0,
            grid=(B, n_t),
            in_specs=[
                pl.BlockSpec((1, tl, C), lambda b, t: (b, t, 0)),       # streamed x tile
                pl.BlockSpec((1, 1, 2, C), lambda b, t: (b, t, 0, 0)),  # circular halos
                pl.BlockSpec((kc, D), lambda b, t: (0, 0)),             # resident weight
                pl.BlockSpec((1, D), lambda b, t: (0, 0)),              # resident bias
            ],
            out_specs=pl.BlockSpec((1, tl, D), lambda b, t: (b, t, 0)),
        ),
        compiler_params=pltpu.CompilerParams(
            dimension_semantics=("parallel", "parallel"),
            vmem_limit_bytes=vmem_limit,
        ),
    )(x, halos, w_packed, b_packed)
    return out


def token_embedding_forward(x, weight, bias, *, out_dtype=None, l_tile=None):
    """Convenience wrapper: x (B, L, C_in); weight (D, C_in, 3); bias (D,) -> (B, L, D)."""
    compute_dtype = jnp.bfloat16 if x.dtype == jnp.bfloat16 else jnp.float32
    w_packed, b_packed = prepare_token_embedding_params(weight, bias,
                                                        compute_dtype=compute_dtype)
    return token_embedding_apply(x, w_packed, b_packed,
                                 out_dtype=out_dtype, l_tile=l_tile)


def _reference(x, weight, bias):
    # Pure-JAX reference of the circular conv1d (channels-last), f32.
    x_prev = jnp.roll(x, 1, axis=1)
    x_next = jnp.roll(x, -1, axis=1)
    w = jnp.transpose(weight, (2, 1, 0))  # (3, C, D)
    return (x_prev @ w[0]) + (x @ w[1]) + (x_next @ w[2]) + bias[None, None, :]


if __name__ == "__main__":
    key = jax.random.PRNGKey(0)
    k_x, k_w, k_b, k_x2, k_x3 = jax.random.split(key, 5)

    B, L, C_IN, D_MODEL = 2, 16, 4, 32

    # Input (what the PyTorch forward receives): (B, L, c_in)
    x = jax.random.normal(k_x, (B, L, C_IN), dtype=jnp.float32)

    # Deterministic parameter init mimicking the module's __init__:
    # kaiming_normal_(fan_in, leaky_relu) on Conv1d weight (D, C_in, K=3).
    fan_in = C_IN * 3
    neg_slope = 0.01
    gain = math.sqrt(2.0 / (1.0 + neg_slope ** 2))
    std = gain / math.sqrt(fan_in)
    weight = std * jax.random.normal(k_w, (D_MODEL, C_IN, 3), dtype=jnp.float32)
    bound = 1.0 / math.sqrt(fan_in)
    bias = jax.random.uniform(k_b, (D_MODEL,), dtype=jnp.float32,
                              minval=-bound, maxval=bound)

    # 1) f32 path (matches the PyTorch module numerics; out dtype follows x dtype).
    out = jax.block_until_ready(token_embedding_forward(x, weight, bias))
    ref = _reference(x, weight, bias)
    assert out.shape == (B, L, D_MODEL)
    assert out.dtype == jnp.float32
    assert jnp.allclose(out, ref, atol=1e-5, rtol=1e-5), "f32 mismatch vs reference"

    # 2) Tiled-L path (explicit small tile -> exercises circular halos across tiles).
    L2 = 32
    x2 = jax.random.normal(k_x2, (B, L2, C_IN), dtype=jnp.float32)
    out2 = jax.block_until_ready(token_embedding_forward(x2, weight, bias, l_tile=8))
    ref2 = _reference(x2, weight, bias)
    assert jnp.allclose(out2, ref2, atol=1e-5, rtol=1e-5), "tiled-L mismatch vs reference"

    # 3) B=1 path: auto-split into 2 grid steps (v7x 2-TC sharding) + halo wrap.
    xb1 = jax.random.normal(k_x3, (1, L, C_IN), dtype=jnp.float32)
    out3 = jax.block_until_ready(token_embedding_forward(xb1, weight, bias))
    ref3 = _reference(xb1, weight, bias)
    assert jnp.allclose(out3, ref3, atol=1e-5, rtol=1e-5), "B=1 split mismatch vs reference"

    # 4) bf16 activations: bf16 x reads, bf16 MXU matmul (f32 accumulation), bf16 stores.
    x_bf16 = x.astype(jnp.bfloat16)
    out4 = jax.block_until_ready(token_embedding_forward(x_bf16, weight, bias))
    assert out4.dtype == jnp.bfloat16
    ref4 = _reference(x_bf16.astype(jnp.float32),
                      weight.astype(jnp.bfloat16).astype(jnp.float32), bias)
    assert jnp.allclose(out4.astype(jnp.float32), ref4, atol=5e-2, rtol=5e-2), \
        "bf16 mismatch vs reference"

    print("KERNEL_OK")
</pallas_src>

<mosaic_0001>
module attributes {stable_mosaic.version = 11 : i64} {
  func.func @kernel(%arg0: i32, %arg1: i32, %arg2: memref<1x16x4xf32, #tpu.memory_space<vmem>>, %arg3: memref<1x1x2x4xf32, #tpu.memory_space<vmem>>, %arg4: memref<12x32xf32, #tpu.memory_space<vmem>>, %arg5: memref<1x32xf32, #tpu.memory_space<vmem>>, %arg6: memref<1x16x32xf32, #tpu.memory_space<vmem>>) attributes {dimension_semantics = [#tpu.dimension_semantics<parallel>, #tpu.dimension_semantics<parallel>], iteration_bounds = array<i64: 2, 1>, scalar_prefetch = 0 : i64, scratch_operands = 0 : i64, tpu.core_type = #tpu.core_type<tc>, window_params = [{transform_indices = @transform_0, window_bounds = array<i64: 1, 16, 4>}, {transform_indices = @transform_1, window_bounds = array<i64: 1, 1, 2, 4>}, {pipeline_mode = #tpu.pipeline_mode<synchronous>, transform_indices = @transform_2, window_bounds = array<i64: 12, 32>}, {pipeline_mode = #tpu.pipeline_mode<synchronous>, transform_indices = @transform_3, window_bounds = array<i64: 1, 32>}, {transform_indices = @transform_4, window_bounds = array<i64: 1, 16, 32>}]} {
    %c0 = arith.constant 0 : index
    %c0_0 = arith.constant 0 : index
    %c0_1 = arith.constant 0 : index
    %0 = vector.load %arg2[%c0, %c0_0, %c0_1] : memref<1x16x4xf32, #tpu.memory_space<vmem>>, vector<1x16x4xf32>
    %1 = vector.shape_cast %0 : vector<1x16x4xf32> to vector<16x4xf32>
    %c0_2 = arith.constant 0 : index
    %c0_3 = arith.constant 0 : index
    %c0_4 = arith.constant 0 : index
    %c0_5 = arith.constant 0 : index
    %2 = vector.load %arg3[%c0_2, %c0_3, %c0_4, %c0_5] : memref<1x1x2x4xf32, #tpu.memory_space<vmem>>, vector<1x1x2x4xf32>
    %3 = vector.shape_cast %2 : vector<1x1x2x4xf32> to vector<2x4xf32>
    %c1_i32 = arith.constant 1 : i32
    %4 = tpu.dynamic_rotate %1 by %c1_i32 dim 0 : vector<16x4xf32>, i32 -> vector<16x4xf32>
    %c15_i32 = arith.constant 15 : i32
    %5 = tpu.dynamic_rotate %1 by %c15_i32 dim 0 : vector<16x4xf32>, i32 -> vector<16x4xf32>
    %6 = tpu.iota {dimensions = array<i32: 0>} : vector<16x4xi32>
    %c0_i32 = arith.constant 0 : i32
    %7 = vector.broadcast %c0_i32 : i32 to vector<16x4xi32>
    %8 = arith.cmpi eq, %6, %7 : vector<16x4xi32>
    %9 = vector.extract_strided_slice %3 {offsets = [0, 0], sizes = [1, 4], strides = [1, 1]} : vector<2x4xf32> to vector<1x4xf32>
    %10 = vector.shape_cast %9 : vector<1x4xf32> to vector<1x4xf32>
    %11 = vector.broadcast %10 : vector<1x4xf32> to vector<16x4xf32>
    %12 = arith.select %8, %11, %4 : vector<16x4xi1>, vector<16x4xf32>
    %c15_i32_6 = arith.constant 15 : i32
    %13 = vector.broadcast %c15_i32_6 : i32 to vector<16x4xi32>
    %14 = arith.cmpi eq, %6, %13 : vector<16x4xi32>
    %15 = vector.extract_strided_slice %3 {offsets = [1, 0], sizes = [1, 4], strides = [1, 1]} : vector<2x4xf32> to vector<1x4xf32>
    %16 = vector.shape_cast %15 : vector<1x4xf32> to vector<1x4xf32>
    %17 = vector.broadcast %16 : vector<1x4xf32> to vector<16x4xf32>
    %18 = arith.select %14, %17, %5 : vector<16x4xi1>, vector<16x4xf32>
    %19 = tpu.concatenate %12, %1, %18 in 1 : vector<16x4xf32>, vector<16x4xf32>, vector<16x4xf32> -> vector<16x12xf32>
    %c0_7 = arith.constant 0 : index
    %c0_8 = arith.constant 0 : index
    %20 = vector.load %arg4[%c0_7, %c0_8] : memref<12x32xf32, #tpu.memory_space<vmem>>, vector<12x32xf32>
    %cst = arith.constant dense<0.000000e+00> : vector<16x32xf32>
    %21 = tpu.matmul %19, %20, %cst {dimension_numbers = #tpu.dot_dimension_numbers<[1], [0], [0], [1], [0, 0, 1, 1], [], []>} : vector<16x12xf32>, vector<12x32xf32>, vector<16x32xf32> -> vector<16x32xf32>
    %c0_9 = arith.constant 0 : index
    %c0_10 = arith.constant 0 : index
    %22 = vector.load %arg5[%c0_9, %c0_10] : memref<1x32xf32, #tpu.memory_space<vmem>>, vector<1x32xf32>
    %23 = vector.broadcast %22 : vector<1x32xf32> to vector<16x32xf32>
    %24 = arith.addf %21, %23 : vector<16x32xf32>
    %c0_11 = arith.constant 0 : index
    %c0_12 = arith.constant 0 : index
    %c0_13 = arith.constant 0 : index
    %25 = vector.load %arg6[%c0_11, %c0_12, %c0_13] : memref<1x16x32xf32, #tpu.memory_space<vmem>>, vector<1x16x32xf32>
    %26 = vector.shape_cast %25 : vector<1x16x32xf32> to vector<16x32xf32>
    %27 = vector.shape_cast %24 : vector<16x32xf32> to vector<1x16x32xf32>
    tpu.vector_store %arg6[%c0_11, %c0_12, %c0_13], %27 {strides = array<i32>} : memref<1x16x32xf32, #tpu.memory_space<vmem>>, vector<1x16x32xf32>,
    return
  }
  func.func @transform_0(%arg0: i32, %arg1: i32) -> (i32, i32, i32) {
    %c0_i32 = arith.constant 0 : i32
    %c0_i32_0 = arith.constant 0 : i32
    return %arg0, %arg1, %c0_i32 : i32, i32, i32
  }
  func.func @transform_1(%arg0: i32, %arg1: i32) -> (i32, i32, i32, i32) {
    %c0_i32 = arith.constant 0 : i32
    %c0_i32_0 = arith.constant 0 : i32
    %c0_i32_1 = arith.constant 0 : i32
    return %arg0, %arg1, %c0_i32, %c0_i32_0 : i32, i32, i32, i32
  }
  func.func @transform_2(%arg0: i32, %arg1: i32) -> (i32, i32) {
    %c0_i32 = arith.constant 0 : i32
    %c0_i32_0 = arith.constant 0 : i32
    %c0_i32_1 = arith.constant 0 : i32
    return %c0_i32, %c0_i32_0 : i32, i32
  }
  func.func @transform_3(%arg0: i32, %arg1: i32) -> (i32, i32) {
    %c0_i32 = arith.constant 0 : i32
    %c0_i32_0 = arith.constant 0 : i32
    %c0_i32_1 = arith.constant 0 : i32
    return %c0_i32, %c0_i32_0 : i32, i32
  }
  func.func @transform_4(%arg0: i32, %arg1: i32) -> (i32, i32, i32) {
    %c0_i32 = arith.constant 0 : i32
    %c0_i32_0 = arith.constant 0 : i32
    return %arg0, %arg1, %c0_i32 : i32, i32, i32
  }
}

</mosaic_0001>

<bundles_post_ra>
// kernel: tpu_custom_call.1
= control target key start
LH: loop header
LB: loop body
LE: loop exit
PB: predicated region body
PF: predicated region fallthrough
CT: control target
= control target key end

     0   :  { %9 = vsyncpa [#allocation3], 0  ;;  %s758_s0 = inlined_call_operand.vmem [shape: f32[2,16,4], index: 0, kind: input, shape index: {}]   ;;  %s759_s1 = inlined_call_operand.vmem [shape: f32[2,1,2,4], index: 1, kind: input, shape index: {}]   ;;  %s760_s2 = inlined_call_operand.vmem [shape: f32[12,32], index: 2, kind: input, shape index: {}]   ;;  %s761_s3 = inlined_call_operand.vmem [shape: f32[1,32], index: 3, kind: input, shape index: {}]   ;;  %s762_s4 = inlined_call_operand.hbm [shape: f32[2,16,32], index: 4, kind: output, shape index: {}]  }
   0x1   :  { %11 = vsyncpa [#allocation3 + $0x1], 0  ;;  %s646_s15 = smov 0   ;;  %s648_s16 = smov 0  }
   0x2   :  { %s650_s17 = smov 0   ;;  %s652_s18 = smov 0  }
   0x3   :  { %s654_s19 = smov 0   ;;  %s656_s20 = smov 0  }
   0x4 LB: > { %s458_s21 = sadd.s32 4294967295, %s616_s20   ;;  %s459_s22 = sadd.s32 4294967294, %s616_s20   ;;  %s616_s20 = sphi %s656_s20, %s17_s20   ;;  %s612_s19 = sphi %s654_s19, %s769_s19   ;;  %s608_s18 = sphi %s652_s18, %s768_s18   ;;  %s604_s17 = sphi %s650_s17, %s767_s17   ;;  %s600_s16 = sphi %s648_s16, %s766_s16   ;;  %s596_s15 = sphi %s646_s15, %s765_s15  }
   0x5   : > { %s29_s23 = sadd.s32 1, %s612_s19  ;;  %s136_s24 = sadd.s32 1, %s604_s17 }
   0x6   : > { %p31_p0 = scmp.ge.s32.totalorder %s29_s23, 2  ;;  %p146_p1 = scmp.ne.s32.totalorder %s604_s17, %s600_s16 }
   0x7   : > { %p147_p2 = scmp.eq.s32.totalorder %s458_s21, 1  ;;  %p152_p3 = scmp.ne.s32.totalorder %s600_s16, %s596_s15 }
   0x8   : > { %s771_s23 = smov (%p31_p0, %s29_s23), 0  ;;  %p153_p5 = scmp.eq.s32.totalorder %s459_s22, 1 }
   0x9   : > { %p686_p4 = por %p147_p2, %p146_p1  ;;  %s131_s26 = ssub.s32 %s612_s19, %s771_s23 }
   0xa   : > { %p462_p6 = scmp.ge.s32.totalorder %s616_s20, 1  ;;  %p134_p7 = scmp.eq.s32.totalorder %s131_s26, 0 }
   0xb   : > { %p693_p8 = por %p153_p5, %p152_p3  ;;  %p200_p9 = scmp.lt.s32.totalorder %s616_s20, 3 }
   0xc   : > { %s699_s28 = scalar_select %p134_p7, %s604_s17, %s136_s24  }
   0xd   : > { %p201_p10 = pnand %p462_p6, %p200_p9 }
   0xe   : > { %p238_p11 = scmp.lt.s32.totalorder (!%p201_p10), %s608_s18, 1  ;;  %s618_s14 = smov (!%p201_p10), 4  }
   0xf   : > { %204 = sbr.rel (%p201_p10) target bundleno = 284 (0x11c), region = 36  ;;  %s619_s21 = smov (!%p201_p10), 8  }
  0x10   : > { %s234_s26 = sand.u32 (!%p201_p10), 1, %s600_s16  }
  0x11   : > { %s463_s29 = sshll.u32 (!%p201_p10), %s234_s26, 4 }
  0x14   : > { %v260_v0 = vlaneseq  ;;  %v304_v1 = vld [vmem:[%s760_s2 + $0x8] sm:$0xf]  ;;  %vm316_vm0 = vcmask 1043456   ;;  %s239_s5 = scalar_select %p238_p11, %s608_s18, 1  ;;  %v303_v18 = vld [vmem:[%s760_s2] sm:$0xff]  ;;  %vm297_vm5 = vcmask 31744  }
  0x15   : > { %467 = vmatpush.msk.msra.mxu0 %vm316_vm0, %v304_v1  ;;  %477 = vmatpush.msk.msra.mxu1 %vm316_vm0, %v304_v1  ;;  %vm300_vm6 = vcmask 64512   ;;  %vm309_vm7 = vcmask 97280   ;;  %v537_v28 = vld [vmem:[%s761_s3] ss:$0 sm:$0xff]  ;;  %vm343_vm8 = vcmask 261120  }
  0x16   : > { %v261_v2 = vshrl.u32 %v260_v0, 7  ;;  %s475_s6 = sshll.u32 %s239_s5, 4  ;;  %s466_s7 = sshll.u32 %s239_s5, 1 }
  0x17   : > { %s245_s10 = scalar_lea.vmem %s758_s0, %s475_s6  ;;  %s253_s13 = scalar_lea.vmem %s759_s1, %s466_s7  ;;  %335 = vmatpush.msra.mxu0 %v303_v18  ;;  %478 = vmatpush.msra.mxu1 %v303_v18 }
  0x18   : > { %v255_v3 = vld [vmem:[%s245_s10] sm:$0xff]  ;;  %v256_v4 = vld [vmem:[%s245_s10 + $0x8] sm:$0xff]  ;;  %vm267_vm1 = vcmp.lt.s32.totalorder %v261_v2, 7  ;;  %v270_v8 = vadd.s32 8, %v261_v2  ;;  %vm262_vm3 = vcmp.lt.s32.totalorder %v261_v2, 1  ;;  %vm271_vm4 = vcmp.eq.s32.totalorder %v261_v2, 0 }
  0x19   : > { %283 = vrot.lane.b32.xlu0 %v255_v3, %s618_s14  ;;  %v265_v5 = vrot.slane %v255_v3, 1  ;;  %v266_v6 = vrot.slane %v256_v4, 1  ;;  %v257_v7 = vld [vmem:[%s253_s13] sm:$0x3]  ;;  %v259_v13 = vrot.slane %v256_v4, 7  ;;  %v258_v14 = vrot.slane %v255_v3, 7 }
  0x1a   : > { %v278_v10 = vperm.slane %v257_v7, 1  ;;  %vm277_vm2 = vcmp.eq.s32.totalorder %v270_v8, 15  ;;  %v273_v15 = vperm.slane %v257_v7, 0  ;;  %s476_s6 = sshll.u32 %s608_s18, 4  ;;  %s236_s7 = scalar_lea.vmem [#allocation2], %s463_s29 }
  0x1b   : > { %v268_v9 = vsel %vm267_vm1, %v265_v5, %v266_v6  ;;  %v269_v11 = vsel %vm267_vm1, %v266_v6, %v265_v5  ;;  %v264_v16 = vsel %vm262_vm3, %v259_v13, %v258_v14  ;;  %v263_v19 = vsel %vm262_vm3, %v258_v14, %v259_v13  ;;  %s360_s10 = scalar_lea.hbm %s762_s4, %s476_s6  ;;  %s361_s11 = sshll.u32 %s236_s7, 4  ;;  %s362_s11 = int_to_ptr.vmem [resolvable:$true] %s361_s11 }
  0x1c   : > { %291 = vrot.lane.b32.xlu1 %v268_v9, %s619_s21  ;;  %v280_v12 = vsel %vm277_vm2, %v278_v10, %v269_v11  ;;  %v274_v17 = vsel %vm271_vm4, %v273_v15, %v264_v16  ;;  %s363_s12 = sshll.u32 %s360_s10, 4  ;;  %s347_s13 = scalar_lea.sflag [#allocation3], %s234_s26  ;;  %s364_s12 = int_to_ptr.hbm [resolvable:$true] %s363_s12 }
  0x1d   : > { %s558_s29 = scalar_lea.hbm %s762_s4, 32 }
  0x21   : > { %285 = vrot.lane.b32.xlu0 %v256_v4, %s618_s14  ;;  %s552_s14 = sshra.s32 %s364_s12, 4  ;;  %s553_s14 = int_to_ptr.hbm [resolvable:$true] %s552_s14 }
  0x22   : > { %s554_s22 = scalar_lea.hbm %s553_s14, 16  ;;  %p559_p1 = scmp.lt.s32.totalorder %s553_s14, %s762_s4 }
  0x23   : > { %p555_p12 = scmp.ne.s32.totalorder %s553_s14, %s554_s22  ;;  %p560_p2 = scmp.lt.s32.totalorder %s558_s29, %s554_s22 }
  0x24   : > { %293 = vrot.lane.b32.xlu1 %v280_v12, %s619_s21 }
  0x25   : > { %p556_p13 = pnand %p555_p12, %p686_p4  ;;  %p561_p3 = por %p560_p2, %p559_p1 }
  0x27   : > { %p557_p0 = pneg %p556_p13 }
  0x29   : > { %p562_p5 = pnand %p561_p3, %p557_p0 }
  0x8b   : > { %v284_v20 = vpop.permute.xlu0 %283 }
  0x8c   : > { %v298_v21 = vsel %vm297_vm5, %v274_v17, %v284_v20 }
  0x8e   : > { %v292_v22 = vpop.permute.xlu1 %291 }
  0x8f   : > { %v301_v23 = vsel %vm300_vm6, %v298_v21, %v292_v22 }
  0x90   : > { %468 = vmatmul.msk.f32.vlgmr.msra.gmra.mxu0 %vm309_vm7, %v301_v23 }
  0x93   : > { %v286_v24 = vpop.permute.xlu0 %285 }
  0x94   : > { %v299_v25 = vsel %vm297_vm5, %v263_v19, %v286_v24 }
  0x96   : > { %v294_v26 = vpop.permute.xlu1 %293 }
  0x97   : > { %v302_v27 = vsel %vm300_vm6, %v299_v25, %v294_v26 }
  0x98   : > { %469 = vmatmul.msk.f32.vlgmr.msra.gmra.mxu1 %vm309_vm7, %v302_v27 }
 0x10d   : > { %v337_v29 = vpop.f32.mrf.mxu0 }
 0x10e   : > { %v338_v30 = vadd.f32 %v537_v28, %v337_v29 }
 0x110   : > { %344 = vst.msk [vmem:[%s236_s7] sm:$0xff] %vm343_vm8, %v338_v30 }
 0x115   : > { %v340_v31 = vpop.f32.mrf.mxu1 }
 0x116   : > { %v341_v32 = vadd.f32 %v537_v28, %v340_v31 }
 0x118   : > { %345 = vst.msk [vmem:[%s236_s7 + $0x8] sm:$0xff] %vm343_vm8, %v341_v32 }
 0x119   : > { %565 = shalt.err (!%p562_p5)
}
 0x11a   : > { %s620_s26 = smov 128  }
 0x11b   : > { %479 = dma.vmem_to_hbm [thread:$0]  (%p686_p4), %s362_s11, 256, %s364_s12, %s347_s13, %s620_s26, %s620_s26, %s619_s21  }
 0x11c PF: > { %p485_p6 = scmp.ge.s32.totalorder %s616_s20, 2  ;;  %s378_s6 = sand.u32 1, %s596_s15  }
 0x11d   : > { %s379_s7 = scalar_lea.sflag [#allocation3], %s378_s6 }
 0x11e   : > { %p482_p7 = pnand %p485_p6, %p693_p8 }
 0x120   : > { %p483_p9 = pneg %p482_p7 }
 0x122   : > { %591 = dma.done.wait (%p483_p9), %s379_s7, 256  }
 0x123   : > { %593 = vsyncadd (%p483_p9), %s379_s7, 4294967040  ;;  %s17_s20 = sadd.s32 1, %s616_s20   ;;  %s765_s15 = smov %s600_s16 }
 0x124   : > { %p14_p10 = scmp.ge.s32.totalorder %s17_s20, 4   ;;  %s766_s16 = smov %s604_s17 }
 0x125   : > { %s767_s17 = smov %s699_s28  ;;  %s768_s18 = smov %s612_s19 }
 0x126   : > { %s769_s19 = smov %s771_s23  ;;  %16 = sbr.rel (!%p14_p10) target bundleno = 4 (0x4), region = 74 }
 0x12b   :  { %385 = vsyncpa [#allocation3], 1 }
 0x12c   :  { %387 = vsyncpa [#allocation3 + $0x1], 1 }

</bundles_post_ra>
